<compile_context>
chip_gen: v7x
topology: tpu7x:2x2x1
jax: 0.10.0
libtpu: 0.0.40
codegen_flags: <defaults>
</compile_context>

<pallas_src>
import functools

import jax
import jax.numpy as jnp
from jax.experimental import pallas as pl
from jax.experimental.pallas import tpu as pltpu

DIM = 3  # self.dimension = 3 in the torch module


def _round_up(x, m):
    return ((x + m - 1) // m) * m


def _chamfer_kernel(src_ref, dst_ref, out_ref, min_sq_ref, *, n_real, tn, mask_pad):
    # src_ref: (1, 3, TM)   -- M on lanes
    # dst_ref: (1, TN, 3)   -- N on sublanes
    # out_ref: (1, 1, TM)
    # min_sq_ref: (1, TM) f32 running min of squared distances (persists over N tiles)
    j = pl.program_id(2)

    @pl.when(j == 0)
    def _():
        min_sq_ref[...] = jnp.full_like(min_sq_ref, jnp.inf)

    tn_blk = dst_ref.shape[1]
    tm_blk = src_ref.shape[2]

    # Accumulate squared distances channel-by-channel; everything stays in
    # (sublane, lane) = (N, M) vregs with no relayouts.
    acc = None
    for c in range(DIM):
        s = src_ref[0, c:c + 1, :].astype(jnp.float32)    # (1, TM)  M on lanes
        d = dst_ref[0, :, c:c + 1].astype(jnp.float32)    # (TN, 1)  N on sublanes
        diff = d - s                                      # (TN, TM)
        sq = diff * diff
        acc = sq if acc is None else acc + sq

    if mask_pad:
        # Mask padded dst rows to +inf so they never win the min.
        row = j * tn + jax.lax.broadcasted_iota(jnp.int32, (tn_blk, 1), 0)
        acc = jnp.where(row < n_real, acc, jnp.inf)

    tile_min = jnp.min(acc, axis=0, keepdims=True)        # (1, TM) lane-dense
    min_sq_ref[...] = jnp.minimum(min_sq_ref[...], tile_min)

    @pl.when(j == pl.num_programs(2) - 1)
    def _():
        # sqrt only on the final (1, TM) result (monotone => same argmin).
        out_ref[0, :, :] = jnp.sqrt(min_sq_ref[...]).astype(out_ref.dtype)


def single_side_chamfer(pc_src, pc_dst, *, tm=256, tn=512):
    """pc_src: (B, 3, M), pc_dst: (B, 3, N) -> (B, M) min Euclidean distances."""
    B, C, M = pc_src.shape
    B2, C2, N = pc_dst.shape
    assert B == B2 and C == DIM and C2 == DIM

    # Tile sizes: 128-aligned, no larger than the padded extents.
    tm = min(tm, _round_up(M, 128))
    tn = min(tn, _round_up(N, 128))
    m_pad = _round_up(M, tm)
    n_pad = _round_up(N, tn)

    src = pc_src
    if m_pad != M:
        src = jnp.pad(src, ((0, 0), (0, 0), (0, m_pad - M)))

    # Transpose dst once so the kernel sees N on sublanes (no per-tile relayout).
    dst_t = jnp.transpose(pc_dst, (0, 2, 1))              # (B, N, 3)
    if n_pad != N:
        dst_t = jnp.pad(dst_t, ((0, 0), (0, n_pad - N), (0, 0)))

    kernel = functools.partial(
        _chamfer_kernel, n_real=N, tn=tn, mask_pad=(n_pad != N))

    out = pl.pallas_call(
        kernel,
        out_shape=jax.ShapeDtypeStruct((B, 1, m_pad), jnp.float32),
        grid_spec=pltpu.PrefetchScalarGridSpec(
            num_scalar_prefetch=0,
            grid=(B, m_pad // tm, n_pad // tn),
            in_specs=[
                pl.BlockSpec((1, DIM, tm), lambda b, i, j: (b, 0, i)),
                pl.BlockSpec((1, tn, DIM), lambda b, i, j: (b, j, 0)),
            ],
            out_specs=pl.BlockSpec((1, 1, tm), lambda b, i, j: (b, 0, i)),
            scratch_shapes=[pltpu.VMEM((1, tm), jnp.float32)],
        ),
        compiler_params=pltpu.CompilerParams(
            dimension_semantics=("parallel", "parallel", "arbitrary"),
            vmem_limit_bytes=32 << 20,
        ),
    )(src, dst_t)
    return out[:, 0, :M]


def _reference(pc_src, pc_dst):
    # Pure-JAX reference mirroring the torch code exactly.
    src_e = pc_src[:, :, :, None]                               # (B, 3, M, 1)
    dst_e = pc_dst[:, :, None, :]                               # (B, 3, 1, N)
    diff = jnp.sqrt(jnp.sum((src_e - dst_e) ** 2, axis=1))      # (B, M, N)
    return jnp.min(diff, axis=2)                                # (B, M)


if __name__ == "__main__":
    key = jax.random.PRNGKey(0)
    k1, k2, k3, k4 = jax.random.split(key, 4)

    # Case 1: small, single tile with N padding/masking.
    B, M, N = 2, 16, 24
    pc_src = jax.random.normal(k1, (B, DIM, M), dtype=jnp.float32)
    pc_dst = jax.random.normal(k2, (B, DIM, N), dtype=jnp.float32)
    out = jax.block_until_ready(single_side_chamfer(pc_src, pc_dst))
    ref = _reference(pc_src, pc_dst)
    assert out.shape == (B, M)
    assert jnp.allclose(out, ref, atol=1e-5, rtol=1e-5), "mismatch (case 1)"

    # Case 2: multi-tile grid (exercises running-min accumulator + padding mask).
    B2, M2, N2 = 2, 200, 300
    pc_src2 = jax.random.normal(k3, (B2, DIM, M2), dtype=jnp.float32)
    pc_dst2 = jax.random.normal(k4, (B2, DIM, N2), dtype=jnp.float32)
    out2 = jax.block_until_ready(
        single_side_chamfer(pc_src2, pc_dst2, tm=128, tn=128))
    ref2 = _reference(pc_src2, pc_dst2)
    assert out2.shape == (B2, M2)
    assert jnp.allclose(out2, ref2, atol=1e-5, rtol=1e-5), "mismatch (case 2)"

    print("KERNEL_OK")
</pallas_src>

<mosaic_0001>
module attributes {stable_mosaic.version = 11 : i64} {
  func.func @_chamfer_kernel(%arg0: i32, %arg1: i32, %arg2: i32, %arg3: memref<1x3x128xf32, #tpu.memory_space<vmem>>, %arg4: memref<1x128x3xf32, #tpu.memory_space<vmem>>, %arg5: memref<1x1x128xf32, #tpu.memory_space<vmem>>, %arg6: memref<1x128xf32, #tpu.memory_space<vmem>>) attributes {dimension_semantics = [#tpu.dimension_semantics<parallel>, #tpu.dimension_semantics<parallel>, #tpu.dimension_semantics<arbitrary>], iteration_bounds = array<i64: 2, 1, 1>, scalar_prefetch = 0 : i64, scratch_operands = 1 : i64, tpu.core_type = #tpu.core_type<tc>, window_params = [{transform_indices = @transform_0, window_bounds = array<i64: 1, 3, 128>}, {transform_indices = @transform_1, window_bounds = array<i64: 1, 128, 3>}, {transform_indices = @transform_2, window_bounds = array<i64: 1, 1, 128>}]} {
    %c0_i32 = arith.constant 0 : i32
    %0 = arith.cmpi eq, %arg2, %c0_i32 : i32
    %1 = arith.extui %0 : i1 to i32
    %c0_i32_0 = arith.constant 0 : i32
    %2 = arith.cmpi ne, %1, %c0_i32_0 : i32
    scf.if %2 {
      %cst_23 = arith.constant 0x7F800000 : f32
      %47 = vector.broadcast %cst_23 : f32 to vector<1x128xf32>
      %c0_24 = arith.constant 0 : index
      %c0_25 = arith.constant 0 : index
      %48 = vector.load %arg6[%c0_24, %c0_25] : memref<1x128xf32, #tpu.memory_space<vmem>>, vector<1x128xf32>
      tpu.vector_store %arg6[%c0_24, %c0_25], %47 {strides = array<i32>} : memref<1x128xf32, #tpu.memory_space<vmem>>, vector<1x128xf32>,
    } else {
    }
    %c0 = arith.constant 0 : index
    %c0_1 = arith.constant 0 : index
    %c0_2 = arith.constant 0 : index
    %3 = vector.load %arg3[%c0, %c0_1, %c0_2] : memref<1x3x128xf32, #tpu.memory_space<vmem>>, vector<1x1x128xf32>
    %4 = vector.shape_cast %3 : vector<1x1x128xf32> to vector<1x128xf32>
    %c0_3 = arith.constant 0 : index
    %c0_4 = arith.constant 0 : index
    %c0_5 = arith.constant 0 : index
    %5 = vector.load %arg4[%c0_3, %c0_4, %c0_5] : memref<1x128x3xf32, #tpu.memory_space<vmem>>, vector<1x128x1xf32>
    %6 = vector.shape_cast %5 : vector<1x128x1xf32> to vector<128x1xf32>
    %7 = vector.broadcast %6 : vector<128x1xf32> to vector<128x128xf32>
    %8 = vector.broadcast %4 : vector<1x128xf32> to vector<128x128xf32>
    %9 = arith.subf %7, %8 : vector<128x128xf32>
    %10 = arith.mulf %9, %9 : vector<128x128xf32>
    %c0_6 = arith.constant 0 : index
    %c1 = arith.constant 1 : index
    %c0_7 = arith.constant 0 : index
    %11 = vector.load %arg3[%c0_6, %c1, %c0_7] : memref<1x3x128xf32, #tpu.memory_space<vmem>>, vector<1x1x128xf32>
    %12 = vector.shape_cast %11 : vector<1x1x128xf32> to vector<1x128xf32>
    %c0_8 = arith.constant 0 : index
    %c0_9 = arith.constant 0 : index
    %c1_10 = arith.constant 1 : index
    %13 = vector.load %arg4[%c0_8, %c0_9, %c1_10] : memref<1x128x3xf32, #tpu.memory_space<vmem>>, vector<1x128x1xf32>
    %14 = vector.shape_cast %13 : vector<1x128x1xf32> to vector<128x1xf32>
    %15 = vector.broadcast %14 : vector<128x1xf32> to vector<128x128xf32>
    %16 = vector.broadcast %12 : vector<1x128xf32> to vector<128x128xf32>
    %17 = arith.subf %15, %16 : vector<128x128xf32>
    %18 = arith.mulf %17, %17 : vector<128x128xf32>
    %19 = arith.addf %10, %18 : vector<128x128xf32>
    %c0_11 = arith.constant 0 : index
    %c2 = arith.constant 2 : index
    %c0_12 = arith.constant 0 : index
    %20 = vector.load %arg3[%c0_11, %c2, %c0_12] : memref<1x3x128xf32, #tpu.memory_space<vmem>>, vector<1x1x128xf32>
    %21 = vector.shape_cast %20 : vector<1x1x128xf32> to vector<1x128xf32>
    %c0_13 = arith.constant 0 : index
    %c0_14 = arith.constant 0 : index
    %c2_15 = arith.constant 2 : index
    %22 = vector.load %arg4[%c0_13, %c0_14, %c2_15] : memref<1x128x3xf32, #tpu.memory_space<vmem>>, vector<1x128x1xf32>
    %23 = vector.shape_cast %22 : vector<1x128x1xf32> to vector<128x1xf32>
    %24 = vector.broadcast %23 : vector<128x1xf32> to vector<128x128xf32>
    %25 = vector.broadcast %21 : vector<1x128xf32> to vector<128x128xf32>
    %26 = arith.subf %24, %25 : vector<128x128xf32>
    %27 = arith.mulf %26, %26 : vector<128x128xf32>
    %28 = arith.addf %19, %27 : vector<128x128xf32>
    %c128_i32 = arith.constant 128 : i32
    %29 = arith.muli %arg2, %c128_i32 : i32
    %30 = tpu.iota {dimensions = array<i32: 0>} : vector<128x1xi32>
    %31 = vector.broadcast %29 : i32 to vector<128x1xi32>
    %32 = arith.addi %31, %30 : vector<128x1xi32>
    %c24_i32 = arith.constant 24 : i32
    %33 = vector.broadcast %c24_i32 : i32 to vector<128x1xi32>
    %34 = arith.cmpi slt, %32, %33 : vector<128x1xi32>
    %cst = arith.constant 0x7F800000 : f32
    %35 = vector.shape_cast %34 : vector<128x1xi1> to vector<128x1xi1>
    %36 = vector.broadcast %35 : vector<128x1xi1> to vector<128x128xi1>
    %37 = vector.broadcast %cst : f32 to vector<128x128xf32>
    %38 = arith.select %36, %28, %37 : vector<128x128xi1>, vector<128x128xf32>
    %cst_16 = arith.constant dense<0x7F800000> : vector<128xf32>
    %39 = vector.multi_reduction <minimumf>, %38, %cst_16 [0] : vector<128x128xf32> to vector<128xf32>
    %40 = vector.shape_cast %39 : vector<128xf32> to vector<1x128xf32>
    %c0_17 = arith.constant 0 : index
    %c0_18 = arith.constant 0 : index
    %41 = vector.load %arg6[%c0_17, %c0_18] : memref<1x128xf32, #tpu.memory_space<vmem>>, vector<1x128xf32>
    %42 = arith.minimumf %41, %40 : vector<1x128xf32>
    %c0_19 = arith.constant 0 : index
    %c0_20 = arith.constant 0 : index
    %43 = vector.load %arg6[%c0_19, %c0_20] : memref<1x128xf32, #tpu.memory_space<vmem>>, vector<1x128xf32>
    tpu.vector_store %arg6[%c0_19, %c0_20], %42 {strides = array<i32>} : memref<1x128xf32, #tpu.memory_space<vmem>>, vector<1x128xf32>,
    %c0_i32_21 = arith.constant 0 : i32
    %44 = arith.cmpi eq, %arg2, %c0_i32_21 : i32
    %45 = arith.extui %44 : i1 to i32
    %c0_i32_22 = arith.constant 0 : i32
    %46 = arith.cmpi ne, %45, %c0_i32_22 : i32
    scf.if %46 {
      %c0_23 = arith.constant 0 : index
      %c0_24 = arith.constant 0 : index
      %47 = vector.load %arg6[%c0_23, %c0_24] : memref<1x128xf32, #tpu.memory_space<vmem>>, vector<1x128xf32>
      %48 = math.sqrt %47 : vector<1x128xf32>
      %c0_25 = arith.constant 0 : index
      %c0_26 = arith.constant 0 : index
      %c0_27 = arith.constant 0 : index
      %49 = vector.load %arg5[%c0_25, %c0_26, %c0_27] : memref<1x1x128xf32, #tpu.memory_space<vmem>>, vector<1x1x128xf32>
      %50 = vector.shape_cast %49 : vector<1x1x128xf32> to vector<1x128xf32>
      %51 = vector.shape_cast %48 : vector<1x128xf32> to vector<1x1x128xf32>
      tpu.vector_store %arg5[%c0_25, %c0_26, %c0_27], %51 {strides = array<i32>} : memref<1x1x128xf32, #tpu.memory_space<vmem>>, vector<1x1x128xf32>,
    } else {
    }
    return
  }
  func.func @transform_0(%arg0: i32, %arg1: i32, %arg2: i32) -> (i32, i32, i32) {
    %c0_i32 = arith.constant 0 : i32
    %c0_i32_0 = arith.constant 0 : i32
    return %arg0, %c0_i32, %arg1 : i32, i32, i32
  }
  func.func @transform_1(%arg0: i32, %arg1: i32, %arg2: i32) -> (i32, i32, i32) {
    %c0_i32 = arith.constant 0 : i32
    %c0_i32_0 = arith.constant 0 : i32
    return %arg0, %arg2, %c0_i32 : i32, i32, i32
  }
  func.func @transform_2(%arg0: i32, %arg1: i32, %arg2: i32) -> (i32, i32, i32) {
    %c0_i32 = arith.constant 0 : i32
    %c0_i32_0 = arith.constant 0 : i32
    return %arg0, %c0_i32, %arg1 : i32, i32, i32
  }
}

</mosaic_0001>

<bundles_post_ra>
// kernel: tpu_custom_call.1
= control target key start
LH: loop header
LB: loop body
LE: loop exit
PB: predicated region body
PF: predicated region fallthrough
CT: control target
= control target key end

     0   :  { %7 = vsyncpa [#allocation4], 0  ;;  %s1110_s0 = inlined_call_operand.vmem [shape: f32[2,3,128], index: 0, kind: input, shape index: {}]   ;;  %s1111_s1 = inlined_call_operand.vmem [shape: f32[2,128,3], index: 1, kind: input, shape index: {}]   ;;  %s1112_s2 = inlined_call_operand.hbm [shape: f32[2,1,128], index: 2, kind: output, shape index: {}]  }
   0x1   :  { %9 = vsyncpa [#allocation4 + $0x1], 0  ;;  %s995_s9 = smov 0   ;;  %s997_s10 = smov 0  }
   0x2   :  { %s999_s11 = smov 0   ;;  %s1001_s12 = smov 0  }
   0x3   :  { %s1003_s13 = smov 0   ;;  %s1005_s14 = smov 0  }
   0x4 LB: > { %s815_s15 = sadd.s32 4294967295, %s973_s14   ;;  %s816_s16 = sadd.s32 4294967294, %s973_s14   ;;  %s973_s14 = sphi %s1005_s14, %s15_s14   ;;  %s969_s13 = sphi %s1003_s13, %s1119_s13   ;;  %s965_s12 = sphi %s1001_s12, %s1118_s12   ;;  %s961_s11 = sphi %s999_s11, %s1117_s11   ;;  %s957_s10 = sphi %s997_s10, %s1116_s10   ;;  %s953_s9 = sphi %s995_s9, %s1115_s9  }
   0x5   : > { %s34_s17 = sadd.s32 1, %s969_s13  ;;  %s99_s18 = sadd.s32 1, %s961_s11 }
   0x6   : > { %p36_p0 = scmp.ge.s32.totalorder %s34_s17, 2  ;;  %p109_p1 = scmp.ne.s32.totalorder %s961_s11, %s957_s10 }
   0x7   : > { %p110_p2 = scmp.eq.s32.totalorder %s815_s15, 1  ;;  %p115_p3 = scmp.ne.s32.totalorder %s957_s10, %s953_s9 }
   0x8   : > { %s1121_s17 = smov (%p36_p0, %s34_s17), 0  ;;  %p116_p5 = scmp.eq.s32.totalorder %s816_s16, 1 }
   0x9   : > { %p1035_p4 = por %p110_p2, %p109_p1  ;;  %s94_s20 = ssub.s32 %s969_s13, %s1121_s17 }
   0xa   : > { %p819_p6 = scmp.ge.s32.totalorder %s973_s14, 1  ;;  %p97_p7 = scmp.eq.s32.totalorder %s94_s20, 0 }
   0xb   : > { %p1042_p8 = por %p116_p5, %p115_p3  ;;  %p157_p9 = scmp.lt.s32.totalorder %s973_s14, 3 }
   0xc   : > { %s1048_s22 = scalar_select %p97_p7, %s961_s11, %s99_s18  }
   0xd   : > { %p158_p10 = pnand %p819_p6, %p157_p9 }
   0xe   : > { %p189_p11 = scmp.lt.s32.totalorder (!%p158_p10), %s965_s12, 1  ;;  %v975_v0 = vmov (!%p158_p10), 1   ;;  %v976_v1 = vmov (!%p158_p10), 0   ;;  %v977_v5 = vmov (!%p158_p10), 2   ;;  %v978_v6 = vmov (!%p158_p10), inf   ;;  %s187_s4 = sand.u32 (!%p158_p10), 1, %s957_s10  }
   0xf   : > { %161 = sbr.rel (%p158_p10) target bundleno = 231 (0xe7), region = 28  ;;  %890 = vset.pattern.permute.xlu1 (!%p158_p10), %v975_v0  ;;  %889 = vset.pattern.permute.xlu0 (!%p158_p10), %v976_v1  ;;  %210 = vst [vmem:[#allocation2] sm:$0x1] (!%p158_p10), %v978_v6  ;;  %s826_s5 = sshll.u32 (!%p158_p10), %s965_s12, 4 }
  0x10   : > { %s188_s6 = scalar_lea.vmem (!%p158_p10), [#allocation3], %s187_s4  ;;  %s1063_s16 = scalar_lea.hbm (!%p158_p10), %s1112_s2, %s826_s5 }
  0x11   : > { %s727_s7 = sshll.u32 (!%p158_p10), %s188_s6, 4  ;;  %s979_s20 = smov (!%p158_p10), [#allocation3]   ;;  %s1065_s7 = int_to_ptr.vmem [resolvable:$true] %s727_s7 }
  0x12   : > { %s895_s18 = scalar_lea.vmem (!%p158_p10), %s1065_s7, 16 }
  0x13   : > { %p896_p12 = scmp.ne.s32.totalorder (!%p158_p10), %s1065_s7, %s895_s18 }
  0x15   : > { %p897_p13 = pnand (!%p158_p10), %p896_p12, %p1035_p4 }
  0x16   : > { %s190_s23 = scalar_select %p189_p11, %s965_s12, 1  ;;  %v698_v50 = vld [vmem:[#allocation2] sm:$0x1] }
  0x17   : > { %s714_s12 = scalar_lea.sflag [#allocation4], %s187_s4  ;;  %p898_p0 = pneg %p897_p13 }
  0x18   : > { %s829_s24 = sshll.u32 %s190_s23, 7  ;;  %s820_s28 = sshll.u32 %s190_s23, 2 }
  0x19   : > { %s204_s27 = scalar_lea.vmem %s1111_s1, %s829_s24  ;;  %s195_s3 = scalar_lea.vmem %s1110_s0, %s820_s28 }
  0x1a   : > { %v212_v2 = vld [vmem:[%s204_s27] sm:$0xff]  ;;  %v213_v3 = vld [vmem:[%s204_s27 + $0x8] sm:$0xff]  ;;  %v214_v4 = vld [vmem:[%s204_s27 + $0x10] sm:$0xff]  ;;  %s899_s23 = sshll.u32 %s979_s20, 4  ;;  %s900_s23 = int_to_ptr.vmem [resolvable:$false] %s899_s23 }
  0x1b   : > { %346 = vperm.xlu1 %890, %v212_v2   ;;  %230 = vperm.xlu0 %889, %v212_v2   ;;  %v824_v9 = vld [vmem:[%s195_s3 + $0x1] ss:$0 sm:$0xff]  ;;  %v823_v10 = vld [vmem:[%s195_s3] ss:$0 sm:$0xff]  ;;  %v825_v23 = vld [vmem:[%s195_s3 + $0x2] ss:$0 sm:$0xff]  ;;  %p902_p1 = scmp.lt.s32.totalorder %s1065_s7, %s900_s23 }
  0x1c   : > { %s901_s24 = scalar_lea.vmem %s900_s23, 32 }
  0x1d   : > { %p903_p2 = scmp.lt.s32.totalorder %s901_s24, %s895_s18 }
  0x1f   : > { %350 = vperm.xlu1 %890, %v213_v3   ;;  %235 = vperm.xlu0 %889, %v213_v3   ;;  %p904_p3 = por %p903_p2, %p902_p1 }
  0x21   : > { %p905_p5 = pnand %p904_p3, %p898_p0 }
  0x23   : > { %354 = vperm.xlu1 %890, %v214_v4   ;;  %240 = vperm.xlu0 %889, %v214_v4  }
  0x27   : > { %892 = vset.pattern.permute.xlu1 %v977_v5  ;;  %891 = vset.pattern.permute.xlu0 %v977_v5 }
  0x28   : > { %467 = vperm.xlu1 %892, %v213_v3   ;;  %463 = vperm.xlu0 %891, %v212_v2  }
  0x2c   : > { %471 = vperm.xlu1 %892, %v214_v4  }
  0x9a   : > { %v347_v7 = vpop.permute.xlu1 %346  ;;  %v231_v8 = vpop.permute.xlu0 %230 }
  0x9b   : > { %v413_v13 = vsub.f32 %v347_v7, %v824_v9  ;;  %v312_v14 = vsub.f32 %v231_v8, %v823_v10 }
  0x9d   : > { %v429_v19 = vmul.f32 %v413_v13, %v413_v13  ;;  %v328_v20 = vmul.f32 %v312_v14, %v312_v14 }
  0x9e   : > { %v351_v11 = vpop.permute.xlu1 %350  ;;  %v236_v12 = vpop.permute.xlu0 %235 }
  0x9f   : > { %v414_v15 = vsub.f32 %v351_v11, %v824_v9  ;;  %v313_v16 = vsub.f32 %v236_v12, %v823_v10  ;;  %v445_v30 = vadd.f32 %v429_v19, %v328_v20 }
  0xa1   : > { %v430_v21 = vmul.f32 %v414_v15, %v414_v15  ;;  %v329_v22 = vmul.f32 %v313_v16, %v313_v16 }
  0xa2   : > { %v355_v17 = vpop.permute.xlu1 %354  ;;  %v241_v18 = vpop.permute.xlu0 %240 }
  0xa3   : > { %v415_v24 = vsub.f32 %v355_v17, %v824_v9  ;;  %v314_v25 = vsub.f32 %v241_v18, %v823_v10  ;;  %v446_v31 = vadd.f32 %v430_v21, %v329_v22 }
  0xa5   : > { %v431_v32 = vmul.f32 %v415_v24, %v415_v24  ;;  %v330_v33 = vmul.f32 %v314_v25, %v314_v25 }
  0xa7   : > { %v468_v26 = vpop.permute.xlu1 %467  ;;  %v464_v27 = vpop.permute.xlu0 %463  ;;  %v447_v40 = vadd.f32 %v431_v32, %v330_v33 }
  0xa8   : > { %v531_v28 = vsub.f32 %v468_v26, %v825_v23  ;;  %v530_v29 = vsub.f32 %v464_v27, %v825_v23 }
  0xaa   : > { %v547_v34 = vmul.f32 %v531_v28, %v531_v28  ;;  %v546_v35 = vmul.f32 %v530_v29, %v530_v29 }
  0xab   : > { %v472_v36 = vpop.permute.xlu1 %471 }
  0xac   : > { %v563_v37 = vadd.f32 %v547_v34, %v446_v31  ;;  %v562_v38 = vadd.f32 %v546_v35, %v445_v30  ;;  %v532_v39 = vsub.f32 %v472_v36, %v825_v23 }
  0xae   : > { %v548_v41 = vmul.f32 %v532_v39, %v532_v39  ;;  %v689_v42 = vmin.f32 %v562_v38, %v563_v37 }
  0xb0   : > { %v564_v43 = vadd.f32 %v548_v41, %v447_v40 }
  0xb2   : > { %v691_v44 = vmin.f32 %v689_v42, %v564_v43 }
  0xb4   : > { %v692_v45 = vrot.slane %v691_v44, 4 }
  0xb6   : > { %v693_v46 = vmin.f32 %v691_v44, %v692_v45 }
  0xb8   : > { %v694_v47 = vrot.slane %v693_v46, 2 }
  0xba   : > { %v695_v48 = vmin.f32 %v693_v46, %v694_v47 }
  0xbc   : > { %v696_v49 = vrot.slane %v695_v48, 1 }
  0xbe   : > { %v697_v51 = vmin.f32 %v695_v48, %v696_v49 }
  0xc0   : > { %v699_v52 = vmin.f32 %v698_v50, %v697_v51 }
  0xc2   : > { %700 = vst [vmem:[#allocation2] sm:$0x1] %v699_v52 }
  0xc9   : > { %v704_v53 = vld [vmem:[#allocation2] sm:$0x1] }
  0xca   : > { %893 = vrsqrt.f32 %v704_v53  ;;  %vm707_vm0 = vcmp.eq.f32.partialorder %v704_v53, inf  ;;  %v710_v56 = vand.u32 2147483648, %v704_v53  ;;  %vm709_vm1 = vcmp.eq.f32.partialorder %v704_v53, 0.0 }
  0xd4   : > { %v894_v54 = vpop.eup %893 }
  0xd5   : > { %v706_v55 = vmul.f32 %v894_v54, %v704_v53 }
  0xd7   : > { %v708_v57 = vsel %vm707_vm0, %v704_v53, %v706_v55 }
  0xd8   : > { %v711_v58 = vsel %vm709_vm1, %v710_v56, %v708_v57 }
  0xd9   : > { %712 = vst [vmem:[%s188_s6] sm:$0x1] %v711_v58 }
  0xda   : > { %908 = shalt.err (!%p905_p5)
}
  0xdb   : > { %s909_s25 = scalar_lea.hbm %s1063_s16, 16  ;;  %s913_s28 = scalar_lea.hbm %s1112_s2, 32 }
  0xdc   : > { %p910_p6 = scmp.ne.s32.totalorder %s1063_s16, %s909_s25  ;;  %p914_p10 = scmp.lt.u32.totalorder %s1063_s16, %s1112_s2 }
  0xdd   : > { %p915_p11 = scmp.lt.u32.totalorder %s913_s28, %s909_s25  ;;  %p917_p13 = scmp.lt.u32.totalorder %s909_s25, %s1063_s16 }
  0xde   : > { %p911_p7 = pnand %p910_p6, %p1035_p4 }
  0xdf   : > { %p916_p12 = por %p915_p11, %p914_p10 }
  0xe0   : > { %p912_p9 = pneg %p911_p7 }
  0xe1   : > { %p918_p0 = por %p917_p13, %p916_p12 }
  0xe3   : > { %p919_p1 = pnand %p918_p0, %p912_p9 }
  0xe5   : > { %922 = shalt.err (!%p919_p1)
}
  0xe6   : > { %830 = dma.vmem_to_hbm [thread:$0]  (%p1035_p4), %s1065_s7, 16, %s1063_s16, %s714_s12  }
  0xe7 PF: > { %p836_p2 = scmp.ge.s32.totalorder %s973_s14, 2  ;;  %s739_s3 = sand.u32 1, %s953_s9  }
  0xe8   : > { %s740_s4 = scalar_lea.sflag [#allocation4], %s739_s3 }
  0xe9   : > { %p833_p3 = pnand %p836_p2, %p1042_p8 }
  0xeb   : > { %948 = dma.done.wait (!%p833_p3), %s740_s4, 16  }
  0xec   : > { %950 = vsyncadd (!%p833_p3), %s740_s4, 4294967280  ;;  %s15_s14 = sadd.s32 1, %s973_s14   ;;  %s1115_s9 = smov %s957_s10 }
  0xed   : > { %p12_p5 = scmp.ge.s32.totalorder %s15_s14, 4   ;;  %s1116_s10 = smov %s961_s11 }
  0xee   : > { %s1117_s11 = smov %s1048_s22  ;;  %s1118_s12 = smov %s969_s13 }
  0xef   : > { %s1119_s13 = smov %s1121_s17  ;;  %14 = sbr.rel (!%p12_p5) target bundleno = 4 (0x4), region = 74 }
  0xf6   :  { %744 = vsyncpa [#allocation4], 1 }
  0xf7   :  { %746 = vsyncpa [#allocation4 + $0x1], 1 }

</bundles_post_ra>
